<compile_context>
chip_gen: v7x
topology: tpu7x:2x2x1
jax: 0.10.0
libtpu: 0.0.40
codegen_flags: <defaults>
</compile_context>

<pallas_src>
import numpy as np

import jax
import jax.numpy as jnp
from jax.experimental import pallas as pl
from jax.experimental.pallas import tpu as pltpu

NUM_FEAT = 10
CAT_COLS = (1, 3, 4, 6, 7)          # from the PyTorch module
NUM_CAT = len(CAT_COLS)
EMBED_DIM = 5
H1, H2 = 20, 10

# Embedded-vector offset of each input column (column order preserved).
_COL_OFFSET = {}
_off = 0
for _c in range(NUM_FEAT):
    _COL_OFFSET[_c] = _off
    _off += EMBED_DIM if _c in CAT_COLS else 1
LIN_IN = _off                        # num_feat - 5 + 5*5 = 30

_HIGH = jax.lax.Precision.HIGHEST    # wrapper-side fold / reference only


def _round_up(n, m):
    return ((n + m - 1) // m) * m


def _mlp_kernel(x_ref, sel_ref, pat_ref, w1x_ref, folded_ref,
                w2_ref, b2_ref, w3_ref, b3_ref, o_ref):
    """One tile of rows; all hidden activations are (H, tile_n) -> lane-dense."""
    x = x_ref[...]                                               # (tn, F) f32

    # Gather + position the categorical codes with a single 0/1 selector
    # matmul (exact for integer-valued floats), then one compare builds the
    # whole stacked one-hot (tn, NUM_CAT * v_pad) in place.
    codes = jnp.dot(x, sel_ref[...], preferred_element_type=jnp.float32)
    onehot = (codes == pat_ref[...]).astype(jnp.float32)         # (tn, Kc)

    # Layer 1: continuous part (categorical columns zeroed in w1x) plus the
    # folded-embedding part (b1 already folded in), both as NT matmuls whose
    # results land as (H1, tn) with rows on lanes.
    h = jnp.einsum('hf,nf->hn', w1x_ref[...], x,
                   preferred_element_type=jnp.float32)
    h = h + jnp.einsum('hk,nk->hn', folded_ref[...], onehot,
                       preferred_element_type=jnp.float32)
    h = jnp.maximum(h, 0.0)                                      # (H1, tn)

    # Layer 2 + ReLU.
    h = jnp.dot(w2_ref[...], h, preferred_element_type=jnp.float32) + b2_ref[...]
    h = jnp.maximum(h, 0.0)                                      # (H2, tn)

    # Layer 3 + sigmoid; lane-dense (1, tn) store.
    logits = jnp.dot(w3_ref[...], h,
                     preferred_element_type=jnp.float32) + b3_ref[...]
    o_ref[...] = jax.nn.sigmoid(logits)


def prepare_params(tables_list, w1, b1, w2, b2, w3, b3):
    """One-time weight preprocessing (hoist out of the per-call path)."""
    v_pad = _round_up(max(t.shape[0] for t in tables_list), 8)
    k_cat = NUM_CAT * v_pad

    # Selector (F, Kc): column block j copies input column CAT_COLS[j].
    # Pattern (1, Kc): the vocab index each one-hot lane represents.
    sel_np = np.zeros((NUM_FEAT, k_cat), np.float32)
    pat_np = np.zeros((1, k_cat), np.float32)
    for j, col in enumerate(CAT_COLS):
        sel_np[col, j * v_pad:(j + 1) * v_pad] = 1.0
        pat_np[0, j * v_pad:(j + 1) * v_pad] = np.arange(v_pad, dtype=np.float32)
    sel = jnp.asarray(sel_np)
    pat = jnp.asarray(pat_np)

    # Fold layer 1 into the embedding tables; fold b1 into block 0 (each row
    # hits exactly one column of block 0).
    blocks = []
    for j, col in enumerate(CAT_COLS):
        off = _COL_OFFSET[col]
        f = jnp.matmul(tables_list[j], w1[off:off + EMBED_DIM, :],
                       precision=_HIGH)                          # (vocab_j, H1)
        if j == 0:
            f = f + b1[None, :]
        blocks.append(jnp.pad(f, ((0, v_pad - f.shape[0]), (0, 0))))
    folded_t = jnp.concatenate(blocks, axis=0).T                 # (H1, Kc)

    # Continuous columns hit layer 1 through a (H1, F) matrix whose
    # categorical columns are zero.
    w1x = jnp.zeros((NUM_FEAT, H1), jnp.float32)
    for col in range(NUM_FEAT):
        if col not in CAT_COLS:
            w1x = w1x.at[col].set(w1[_COL_OFFSET[col]])
    w1x_t = w1x.T                                                # (H1, F)

    w2_t = w2.T                                                  # (H2, H1)
    w3_t = w3.T                                                  # (1, H2)
    b2c = b2.reshape(H2, 1)
    b3c = b3.reshape(1, 1)
    return (sel, pat, w1x_t, folded_t, w2_t, b2c, w3_t, b3c)


def neural_network_income(x, params, *, tile_n=4096):
    """x: (B, S, NUM_FEAT) f32; params: output of prepare_params(). -> (B, S)."""
    sel, pat, w1x_t, folded_t, w2_t, b2c, w3_t, b3c = params
    B, S, F = x.shape
    assert F == NUM_FEAT
    N = B * S
    k_cat = folded_t.shape[1]

    # Large tiles amortize per-step pipeline overhead; multiple of 256 lanes
    # (one MXU pass on v6e/v7x); cap so v7x's two TensorCores get >= 2 steps
    # and tiny inputs don't pad to a huge tile.
    tile_n = max(256, _round_up(min(int(tile_n), 8192), 256))
    tile_n = min(tile_n, max(256, _round_up((N + 1) // 2, 256)))
    n_pad = _round_up(N, tile_n)

    x2 = x.reshape(N, F).astype(jnp.float32)
    if n_pad != N:
        x2 = jnp.pad(x2, ((0, n_pad - N), (0, 0)))               # (n_pad, F)

    out = pl.pallas_call(
        _mlp_kernel,
        out_shape=jax.ShapeDtypeStruct((1, n_pad), jnp.float32),
        grid_spec=pltpu.PrefetchScalarGridSpec(
            num_scalar_prefetch=0,
            grid=(n_pad // tile_n,),
            in_specs=[
                pl.BlockSpec((tile_n, F), lambda i: (i, 0)),     # x tile
                pl.BlockSpec((F, k_cat), lambda i: (0, 0)),      # selector
                pl.BlockSpec((1, k_cat), lambda i: (0, 0)),      # pattern
                pl.BlockSpec((H1, F), lambda i: (0, 0)),         # w1 (continuous)
                pl.BlockSpec((H1, k_cat), lambda i: (0, 0)),     # folded embeddings
                pl.BlockSpec((H2, H1), lambda i: (0, 0)),
                pl.BlockSpec((H2, 1), lambda i: (0, 0)),
                pl.BlockSpec((1, H2), lambda i: (0, 0)),
                pl.BlockSpec((1, 1), lambda i: (0, 0)),
            ],
            out_specs=pl.BlockSpec((1, tile_n), lambda i: (0, i)),
        ),
        compiler_params=pltpu.CompilerParams(
            dimension_semantics=("parallel",),
            vmem_limit_bytes=48 * 1024 * 1024),
    )(x2, sel, pat, w1x_t, folded_t, w2_t, b2c, w3_t, b3c)

    return out[0, :N].reshape(B, S)


def _reference(x, tables_list, w1, b1, w2, b2, w3, b3):
    """Pure-JAX mirror of the PyTorch forward."""
    parts = []
    j = 0
    for col in range(NUM_FEAT):
        if col in CAT_COLS:
            idx = x[:, :, col].astype(jnp.int32)
            parts.append(tables_list[j][idx])                    # (B, S, 5)
            j += 1
        else:
            parts.append(x[:, :, col:col + 1])                   # (B, S, 1)
    emb = jnp.concatenate(parts, axis=2)                         # (B, S, LIN_IN)
    h = jax.nn.relu(jnp.matmul(emb, w1, precision=_HIGH) + b1)
    h = jax.nn.relu(jnp.matmul(h, w2, precision=_HIGH) + b2)
    logits = jnp.matmul(h, w3, precision=_HIGH) + b3
    return jax.nn.sigmoid(logits)[..., 0]


if __name__ == "__main__":
    key = jax.random.PRNGKey(0)

    # Deterministic synthetic "max_min": vocab size per categorical column.
    max_min = {1: 9, 3: 12, 4: 7, 6: 15, 7: 11}

    (k_tab, k_w1, k_b1, k_w2, k_b2, k_w3, k_b3, k_xc, k_xi) = jax.random.split(key, 9)
    tab_keys = jax.random.split(k_tab, NUM_CAT)
    tables_list = [
        jax.random.normal(tab_keys[j], (max_min[col], EMBED_DIM), jnp.float32)
        for j, col in enumerate(CAT_COLS)
    ]

    def _uniform(k, shape, fan_in):
        bound = 1.0 / (fan_in ** 0.5)
        return jax.random.uniform(k, shape, jnp.float32, -bound, bound)

    w1 = _uniform(k_w1, (LIN_IN, H1), LIN_IN)
    b1 = _uniform(k_b1, (H1,), LIN_IN)
    w2 = _uniform(k_w2, (H1, H2), H1)
    b2 = _uniform(k_b2, (H2,), H1)
    w3 = _uniform(k_w3, (H2, 1), H2)
    b3 = _uniform(k_b3, (1,), H2)

    # One-time weight preprocessing (hoisted out of the per-call path).
    params = prepare_params(tables_list, w1, b1, w2, b2, w3, b3)

    # Example input: batch=2, seq=8, num_feat=10 (5 continuous + 5 categorical
    # stored as integer-valued floats, exactly as the PyTorch module expects).
    B, S = 2, 8
    cont_cols = [c for c in range(NUM_FEAT) if c not in CAT_COLS]
    x = jnp.zeros((B, S, NUM_FEAT), jnp.float32)
    x_cont = jax.random.normal(k_xc, (B, S, len(cont_cols)), jnp.float32)
    for j, c in enumerate(cont_cols):
        x = x.at[:, :, c].set(x_cont[:, :, j])
    idx_keys = jax.random.split(k_xi, NUM_CAT)
    for j, c in enumerate(CAT_COLS):
        x = x.at[:, :, c].set(
            jax.random.randint(idx_keys[j], (B, S), 0, max_min[c]).astype(jnp.float32))

    out = neural_network_income(x, params)
    out = jax.block_until_ready(out)

    ref = _reference(x, tables_list, w1, b1, w2, b2, w3, b3)
    assert out.shape == (B, S) and out.dtype == jnp.float32
    err = float(jnp.max(jnp.abs(out - ref)))
    assert jnp.allclose(out, ref, atol=1e-4, rtol=1e-4), err

    print("KERNEL_OK")
</pallas_src>

<mosaic_0001>
module attributes {stable_mosaic.version = 11 : i64} {
  func.func @_mlp_kernel(%arg0: i32, %arg1: memref<256x10xf32, #tpu.memory_space<vmem>>, %arg2: memref<10x80xf32, #tpu.memory_space<vmem>>, %arg3: memref<1x80xf32, #tpu.memory_space<vmem>>, %arg4: memref<20x10xf32, #tpu.memory_space<vmem>>, %arg5: memref<20x80xf32, #tpu.memory_space<vmem>>, %arg6: memref<10x20xf32, #tpu.memory_space<vmem>>, %arg7: memref<10x1xf32, #tpu.memory_space<vmem>>, %arg8: memref<1x10xf32, #tpu.memory_space<vmem>>, %arg9: memref<1x1xf32, #tpu.memory_space<vmem>>, %arg10: memref<1x256xf32, #tpu.memory_space<vmem>>) attributes {dimension_semantics = [#tpu.dimension_semantics<parallel>], iteration_bounds = array<i64: 1>, scalar_prefetch = 0 : i64, scratch_operands = 0 : i64, tpu.core_type = #tpu.core_type<tc>, window_params = [{transform_indices = @transform_0, window_bounds = array<i64: 256, 10>}, {pipeline_mode = #tpu.pipeline_mode<synchronous>, transform_indices = @transform_1, window_bounds = array<i64: 10, 80>}, {pipeline_mode = #tpu.pipeline_mode<synchronous>, transform_indices = @transform_2, window_bounds = array<i64: 1, 80>}, {pipeline_mode = #tpu.pipeline_mode<synchronous>, transform_indices = @transform_3, window_bounds = array<i64: 20, 10>}, {pipeline_mode = #tpu.pipeline_mode<synchronous>, transform_indices = @transform_4, window_bounds = array<i64: 20, 80>}, {pipeline_mode = #tpu.pipeline_mode<synchronous>, transform_indices = @transform_5, window_bounds = array<i64: 10, 20>}, {pipeline_mode = #tpu.pipeline_mode<synchronous>, transform_indices = @transform_6, window_bounds = array<i64: 10, 1>}, {pipeline_mode = #tpu.pipeline_mode<synchronous>, transform_indices = @transform_7, window_bounds = array<i64: 1, 10>}, {pipeline_mode = #tpu.pipeline_mode<synchronous>, transform_indices = @transform_8, window_bounds = array<i64: 1, 1>}, {transform_indices = @transform_9, window_bounds = array<i64: 1, 256>}]} {
    %c0 = arith.constant 0 : index
    %c0_0 = arith.constant 0 : index
    %0 = vector.load %arg1[%c0, %c0_0] : memref<256x10xf32, #tpu.memory_space<vmem>>, vector<256x10xf32>
    %c0_1 = arith.constant 0 : index
    %c0_2 = arith.constant 0 : index
    %1 = vector.load %arg2[%c0_1, %c0_2] : memref<10x80xf32, #tpu.memory_space<vmem>>, vector<10x80xf32>
    %cst = arith.constant dense<0.000000e+00> : vector<256x80xf32>
    %2 = tpu.matmul %0, %1, %cst {dimension_numbers = #tpu.dot_dimension_numbers<[1], [0], [0], [1], [0, 0, 1, 1], [], []>} : vector<256x10xf32>, vector<10x80xf32>, vector<256x80xf32> -> vector<256x80xf32>
    %c0_3 = arith.constant 0 : index
    %c0_4 = arith.constant 0 : index
    %3 = vector.load %arg3[%c0_3, %c0_4] : memref<1x80xf32, #tpu.memory_space<vmem>>, vector<1x80xf32>
    %4 = vector.broadcast %3 : vector<1x80xf32> to vector<256x80xf32>
    %5 = arith.cmpf oeq, %2, %4 : vector<256x80xf32>
    %6 = arith.extui %5 : vector<256x80xi1> to vector<256x80xi32>
    %7 = arith.sitofp %6 : vector<256x80xi32> to vector<256x80xf32>
    %c0_5 = arith.constant 0 : index
    %c0_6 = arith.constant 0 : index
    %8 = vector.load %arg4[%c0_5, %c0_6] : memref<20x10xf32, #tpu.memory_space<vmem>>, vector<20x10xf32>
    "tpu.trace_start"() <{level = 10 : i32, message = "hf,nf->hn"}> : () -> ()
    %cst_7 = arith.constant dense<0.000000e+00> : vector<20x256xf32>
    %9 = tpu.matmul %8, %0, %cst_7 {dimension_numbers = #tpu.dot_dimension_numbers<[1], [1], [0], [0], [0, 0, 1, 0], [], []>} : vector<20x10xf32>, vector<256x10xf32>, vector<20x256xf32> -> vector<20x256xf32>
    "tpu.trace_stop"() : () -> ()
    %c0_8 = arith.constant 0 : index
    %c0_9 = arith.constant 0 : index
    %10 = vector.load %arg5[%c0_8, %c0_9] : memref<20x80xf32, #tpu.memory_space<vmem>>, vector<20x80xf32>
    "tpu.trace_start"() <{level = 10 : i32, message = "hk,nk->hn"}> : () -> ()
    %cst_10 = arith.constant dense<0.000000e+00> : vector<20x256xf32>
    %11 = tpu.matmul %10, %7, %cst_10 {dimension_numbers = #tpu.dot_dimension_numbers<[1], [1], [0], [0], [0, 0, 1, 0], [], []>} : vector<20x80xf32>, vector<256x80xf32>, vector<20x256xf32> -> vector<20x256xf32>
    "tpu.trace_stop"() : () -> ()
    %12 = arith.addf %9, %11 : vector<20x256xf32>
    %cst_11 = arith.constant 0.000000e+00 : f32
    %13 = vector.broadcast %cst_11 : f32 to vector<20x256xf32>
    %14 = arith.maximumf %12, %13 : vector<20x256xf32>
    %c0_12 = arith.constant 0 : index
    %c0_13 = arith.constant 0 : index
    %15 = vector.load %arg6[%c0_12, %c0_13] : memref<10x20xf32, #tpu.memory_space<vmem>>, vector<10x20xf32>
    %cst_14 = arith.constant dense<0.000000e+00> : vector<10x256xf32>
    %16 = tpu.matmul %15, %14, %cst_14 {dimension_numbers = #tpu.dot_dimension_numbers<[1], [0], [0], [1], [0, 0, 1, 1], [], []>} : vector<10x20xf32>, vector<20x256xf32>, vector<10x256xf32> -> vector<10x256xf32>
    %c0_15 = arith.constant 0 : index
    %c0_16 = arith.constant 0 : index
    %17 = vector.load %arg7[%c0_15, %c0_16] : memref<10x1xf32, #tpu.memory_space<vmem>>, vector<10x1xf32>
    %18 = vector.broadcast %17 : vector<10x1xf32> to vector<10x256xf32>
    %19 = arith.addf %16, %18 : vector<10x256xf32>
    %cst_17 = arith.constant 0.000000e+00 : f32
    %20 = vector.broadcast %cst_17 : f32 to vector<10x256xf32>
    %21 = arith.maximumf %19, %20 : vector<10x256xf32>
    %c0_18 = arith.constant 0 : index
    %c0_19 = arith.constant 0 : index
    %22 = vector.load %arg8[%c0_18, %c0_19] : memref<1x10xf32, #tpu.memory_space<vmem>>, vector<1x10xf32>
    %cst_20 = arith.constant dense<0.000000e+00> : vector<1x256xf32>
    %23 = tpu.matmul %22, %21, %cst_20 {dimension_numbers = #tpu.dot_dimension_numbers<[1], [0], [0], [1], [0, 0, 1, 1], [], []>} : vector<1x10xf32>, vector<10x256xf32>, vector<1x256xf32> -> vector<1x256xf32>
    %c0_21 = arith.constant 0 : index
    %c0_22 = arith.constant 0 : index
    %24 = vector.load %arg9[%c0_21, %c0_22] : memref<1x1xf32, #tpu.memory_space<vmem>>, vector<1x1xf32>
    %25 = vector.broadcast %24 : vector<1x1xf32> to vector<1x256xf32>
    %26 = arith.addf %23, %25 : vector<1x256xf32>
    %27 = arith.negf %26 : vector<1x256xf32>
    %28 = math.exp %27 : vector<1x256xf32>
    %cst_23 = arith.constant 1.000000e+00 : f32
    %29 = vector.broadcast %cst_23 : f32 to vector<1x256xf32>
    %30 = arith.addf %29, %28 : vector<1x256xf32>
    %31 = arith.divf %29, %30 : vector<1x256xf32>
    %c0_24 = arith.constant 0 : index
    %c0_25 = arith.constant 0 : index
    %32 = vector.load %arg10[%c0_24, %c0_25] : memref<1x256xf32, #tpu.memory_space<vmem>>, vector<1x256xf32>
    tpu.vector_store %arg10[%c0_24, %c0_25], %31 {strides = array<i32>} : memref<1x256xf32, #tpu.memory_space<vmem>>, vector<1x256xf32>,
    return
  }
  func.func @transform_0(%arg0: i32) -> (i32, i32) {
    %c0_i32 = arith.constant 0 : i32
    %c0_i32_0 = arith.constant 0 : i32
    return %arg0, %c0_i32 : i32, i32
  }
  func.func @transform_1(%arg0: i32) -> (i32, i32) {
    %c0_i32 = arith.constant 0 : i32
    %c0_i32_0 = arith.constant 0 : i32
    %c0_i32_1 = arith.constant 0 : i32
    return %c0_i32, %c0_i32_0 : i32, i32
  }
  func.func @transform_2(%arg0: i32) -> (i32, i32) {
    %c0_i32 = arith.constant 0 : i32
    %c0_i32_0 = arith.constant 0 : i32
    %c0_i32_1 = arith.constant 0 : i32
    return %c0_i32, %c0_i32_0 : i32, i32
  }
  func.func @transform_3(%arg0: i32) -> (i32, i32) {
    %c0_i32 = arith.constant 0 : i32
    %c0_i32_0 = arith.constant 0 : i32
    %c0_i32_1 = arith.constant 0 : i32
    return %c0_i32, %c0_i32_0 : i32, i32
  }
  func.func @transform_4(%arg0: i32) -> (i32, i32) {
    %c0_i32 = arith.constant 0 : i32
    %c0_i32_0 = arith.constant 0 : i32
    %c0_i32_1 = arith.constant 0 : i32
    return %c0_i32, %c0_i32_0 : i32, i32
  }
  func.func @transform_5(%arg0: i32) -> (i32, i32) {
    %c0_i32 = arith.constant 0 : i32
    %c0_i32_0 = arith.constant 0 : i32
    %c0_i32_1 = arith.constant 0 : i32
    return %c0_i32, %c0_i32_0 : i32, i32
  }
  func.func @transform_6(%arg0: i32) -> (i32, i32) {
    %c0_i32 = arith.constant 0 : i32
    %c0_i32_0 = arith.constant 0 : i32
    %c0_i32_1 = arith.constant 0 : i32
    return %c0_i32, %c0_i32_0 : i32, i32
  }
  func.func @transform_7(%arg0: i32) -> (i32, i32) {
    %c0_i32 = arith.constant 0 : i32
    %c0_i32_0 = arith.constant 0 : i32
    %c0_i32_1 = arith.constant 0 : i32
    return %c0_i32, %c0_i32_0 : i32, i32
  }
  func.func @transform_8(%arg0: i32) -> (i32, i32) {
    %c0_i32 = arith.constant 0 : i32
    %c0_i32_0 = arith.constant 0 : i32
    %c0_i32_1 = arith.constant 0 : i32
    return %c0_i32, %c0_i32_0 : i32, i32
  }
  func.func @transform_9(%arg0: i32) -> (i32, i32) {
    %c0_i32 = arith.constant 0 : i32
    %c0_i32_0 = arith.constant 0 : i32
    return %c0_i32, %arg0 : i32, i32
  }
}

</mosaic_0001>

<bundles_post_ra>
// kernel: tpu_custom_call.1
= control target key start
LH: loop header
LB: loop body
LE: loop exit
PB: predicated region body
PF: predicated region fallthrough
CT: control target
= control target key end

     0   :  { %s2078_s0 = inlined_call_operand.vmem [shape: f32[256,10], index: 0, kind: input, shape index: {}]   ;;  %s2079_s1 = inlined_call_operand.vmem [shape: f32[10,80], index: 1, kind: input, shape index: {}]   ;;  %s2080_s2 = inlined_call_operand.vmem [shape: f32[1,80], index: 2, kind: input, shape index: {}]   ;;  %s2081_s3 = inlined_call_operand.vmem [shape: f32[20,10], index: 3, kind: input, shape index: {}]   ;;  %s2082_s4 = inlined_call_operand.vmem [shape: f32[20,80], index: 4, kind: input, shape index: {}]   ;;  %s2083_s5 = inlined_call_operand.vmem [shape: f32[10,20], index: 5, kind: input, shape index: {}]   ;;  %s2084_s6 = inlined_call_operand.vmem [shape: f32[10,1], index: 6, kind: input, shape index: {}]   ;;  %s2085_s7 = inlined_call_operand.vmem [shape: f32[1,10], index: 7, kind: input, shape index: {}]   ;;  %s2086_s8 = inlined_call_operand.<no memory space> [shape: f32[1,1], index: 8, kind: input, shape index: {}]   ;;  %s2087_s9 = inlined_call_operand.hbm [shape: f32[1,256], index: 9, kind: output, shape index: {}]  }
   0x1   :  { %v14_v0 = vstv %s2086_s8 }
   0x2   :  { %15 = vst [vmem:[#allocation2] sm:$0x1] %v14_v0 }
   0x3   :  { %v67_v1 = vld [vmem:[%s2079_s1] sm:$0xff]  ;;  %v68_v2 = vld [vmem:[%s2079_s1 + $0x8] sm:$0x3]  ;;  %vm166_vm0 = vcmask 1041408   ;;  %vm1504_vm1 = vmmov 1   ;;  %vm69_vm3 = vcmask 80896  }
   0x4   :  { %v1571_v3 = vld [vmem:[%s2078_s0] sm:$0xff]  ;;  %v1347_v4 = vpack.c.bf16 %v68_v2, %v67_v1  ;;  %vm1573_vm2 = vmpackc.low %vm166_vm0, %vm1504_vm1  ;;  %v1580_v6 = vld [vmem:[%s2078_s0 + $0x8] sm:$0xff] }
   0x5   :  { %v1585_v7 = vld [vmem:[%s2078_s0 + $0x10] sm:$0xff]  ;;  %1299 = vmatprep.mubr.msk.f32.mxu0 %vm69_vm3, %v1571_v3  ;;  %v1404_v8 = vpack.c.bf16 %v1580_v6, %v1571_v3  ;;  %v1594_v9 = vld [vmem:[%s2078_s0 + $0x18] sm:$0xff]  ;;  %v1599_v10 = vld [vmem:[%s2078_s0 + $0x20] sm:$0xff] }
   0x6   :  { %v1604_v11 = vld [vmem:[%s2078_s0 + $0x28] sm:$0xff]  ;;  %1349 = vmatprep.subr.msk.bf16.mxu0 %vm1573_vm2, %v1347_v4  ;;  %v1410_v12 = vpack.c.bf16 %v1594_v9, %v1585_v7  ;;  %v1615_v14 = vld [vmem:[%s2078_s0 + $0x30] sm:$0xff]  ;;  %v1620_v15 = vld [vmem:[%s2078_s0 + $0x38] sm:$0xff] }
   0x7   :  { %v1416_v13 = vpack.c.bf16 %v1604_v11, %v1599_v10  ;;  %v1625_v16 = vld [vmem:[%s2078_s0 + $0x40] sm:$0xff]  ;;  %1352 = vmatpush3.bf16.msk.msra.mxu0 %vm1573_vm2, %v1347_v4  ;;  %v1422_v17 = vpack.c.bf16 %v1620_v15, %v1615_v14  ;;  %v1634_v18 = vld [vmem:[%s2078_s0 + $0x48] sm:$0xff]  ;;  %v1639_v19 = vld [vmem:[%s2078_s0 + $0x50] sm:$0xff] }
   0x8   :  { %v1644_v20 = vld [vmem:[%s2078_s0 + $0x58] sm:$0xff]  ;;  %v1428_v21 = vpack.c.bf16 %v1634_v18, %v1625_v16  ;;  %v1653_v23 = vld [vmem:[%s2078_s0 + $0x60] sm:$0xff]  ;;  %v1658_v24 = vld [vmem:[%s2078_s0 + $0x68] sm:$0xff] }
   0x9   :  { %v1434_v22 = vpack.c.bf16 %v1644_v20, %v1639_v19  ;;  %v1440_v25 = vpack.c.bf16 %v1658_v24, %v1653_v23  ;;  %v1665_v26 = vld [vmem:[%s2078_s0 + $0x70] sm:$0xff]  ;;  %v1670_v27 = vld [vmem:[%s2078_s0 + $0x78] sm:$0xff]  ;;  %v55_v31 = vld [vmem:[%s2078_s0 + $0xa0] sm:$0xff] }
   0xa   :  { %1300 = vmatmul.mubr.msk.f32.vlgmr.msra.gmra.mrb[0].mxu0 %vm69_vm3, %v1580_v6  ;;  %v1446_v28 = vpack.c.bf16 %v1670_v27, %v1665_v26  ;;  %v53_v29 = vld [vmem:[%s2078_s0 + $0x90] sm:$0xff]  ;;  %v54_v30 = vld [vmem:[%s2078_s0 + $0x98] sm:$0xff]  ;;  %v56_v33 = vld [vmem:[%s2078_s0 + $0xa8] sm:$0xff] }
   0xb   :  { %1302 = vmatprep.mubr.msk.f32.mxu0 %vm69_vm3, %v1585_v7  ;;  %v1407_v32 = vpack.c.bf16 %v54_v30, %v53_v29  ;;  %v57_v34 = vld [vmem:[%s2078_s0 + $0xb0] sm:$0xff]  ;;  %v58_v35 = vld [vmem:[%s2078_s0 + $0xb8] sm:$0xff]  ;;  %v1413_v36 = vpack.c.bf16 %v56_v33, %v55_v31  ;;  %v59_v38 = vld [vmem:[%s2078_s0 + $0xc0] sm:$0xff] }
   0xc   :  { %v1419_v37 = vpack.c.bf16 %v58_v35, %v57_v34  ;;  %v60_v39 = vld [vmem:[%s2078_s0 + $0xc8] sm:$0xff]  ;;  %v61_v40 = vld [vmem:[%s2078_s0 + $0xd0] sm:$0xff]  ;;  %v62_v42 = vld [vmem:[%s2078_s0 + $0xd8] sm:$0xff] }
   0xd   :  { %v1425_v41 = vpack.c.bf16 %v60_v39, %v59_v38  ;;  %v63_v43 = vld [vmem:[%s2078_s0 + $0xe0] sm:$0xff]  ;;  %v64_v44 = vld [vmem:[%s2078_s0 + $0xe8] sm:$0xff]  ;;  %v1431_v45 = vpack.c.bf16 %v62_v42, %v61_v40  ;;  %v65_v47 = vld [vmem:[%s2078_s0 + $0xf0] sm:$0xff] }
   0xe   :  { %1303 = vmatmul.mubr.msk.f32.gmra.mrb[2].mxu0 %vm69_vm3, %v1594_v9  ;;  %v1437_v46 = vpack.c.bf16 %v64_v44, %v63_v43  ;;  %v66_v48 = vld [vmem:[%s2078_s0 + $0xf8] sm:$0xff] }
   0xf   :  { %16 = vsyncpa [#allocation4], 0  ;;  %1305 = vmatprep.mubr.msk.f32.mxu0 %vm69_vm3, %v1599_v10  ;;  %v1443_v49 = vpack.c.bf16 %v66_v48, %v65_v47  ;;  %v51_v50 = vld [vmem:[%s2078_s0 + $0x80] sm:$0xff]  ;;  %v52_v51 = vld [vmem:[%s2078_s0 + $0x88] sm:$0xff]  ;;  %vm504_vm5 = vcmask 654336   ;;  %v1505_v58 = vmov 0.0  }
  0x10   :  { %v1401_v52 = vpack.c.bf16 %v52_v51, %v51_v50  ;;  %vm1770_vm4 = vmpackc.low %vm69_vm3, %vm69_vm3  ;;  %v498_v54 = vld [vmem:[%s2081_s3] sm:$0xff]  ;;  %v499_v56 = vld [vmem:[%s2081_s3 + $0x8] sm:$0xff] }
  0x11   :  { %v1836_v55 = vld [vmem:[%s2082_s4] sm:$0xff]  ;;  %1289 = vmatprep.mubr.msk.f32.mxu1 %vm69_vm3, %v498_v54  ;;  %v500_v57 = vld [vmem:[%s2081_s3 + $0x10] sm:$0xf] }
  0x12   :  { %1306 = vmatmul.mubr.msk.f32.gmra.mrb[4].mxu0 %vm69_vm3, %v1604_v11  ;;  %1403 = vmatprep.subr.msk.bf16.mxu1 %vm1770_vm4, %v1401_v52  ;;  %v1856_v59 = vld [vmem:[%s2080_s2] ss:$0 sm:$0xff] }
  0x13   :  { %1308 = vmatprep.mubr.msk.f32.mxu0 %vm69_vm3, %v1615_v14  ;;  %1406 = vmatpush3.bf16.xpose.msk.msra.mxu1 %vm1770_vm4, %v1404_v8 }
  0x14   :  { %1409 = vmatprep.subr.msk.bf16.mxu1 %vm1770_vm4, %v1407_v32 }
  0x16   :  { %1309 = vmatmul.mubr.msk.f32.gmra.mrb[6].mxu0 %vm69_vm3, %v1620_v15 }
  0x17   :  { %1311 = vmatprep.mubr.msk.f32.mxu0 %vm69_vm3, %v1625_v16 }
  0x1a   :  { %1312 = vmatmul.mubr.msk.f32.gmra.mrb[8].mxu0 %vm69_vm3, %v1634_v18 }
  0x1b   :  { %1314 = vmatprep.mubr.msk.f32.mxu0 %vm69_vm3, %v1639_v19  ;;  %1412 = vmatpush3.bf16.xpose.msk.msra.mxu1 %vm1770_vm4, %v1410_v12 }
  0x1c   :  { %1415 = vmatprep.subr.msk.bf16.mxu1 %vm1770_vm4, %v1413_v36 }
  0x1e   :  { %1315 = vmatmul.mubr.msk.f32.gmra.mrb[10].mxu0 %vm69_vm3, %v1644_v20 }
  0x1f   :  { %1317 = vmatprep.mubr.msk.f32.mxu0 %vm69_vm3, %v1653_v23 }
  0x22   :  { %1318 = vmatmul.mubr.msk.f32.gmra.mrb[12].mxu0 %vm69_vm3, %v1658_v24 }
  0x23   :  { %1320 = vmatprep.mubr.msk.f32.mxu0 %vm69_vm3, %v1665_v26  ;;  %1418 = vmatpush3.bf16.xpose.msk.msra.mxu1 %vm1770_vm4, %v1416_v13 }
  0x24   :  { %1421 = vmatprep.subr.msk.bf16.mxu1 %vm1770_vm4, %v1419_v37 }
  0x26   :  { %1321 = vmatmul.mubr.msk.f32.gmra.mrb[14].mxu0 %vm69_vm3, %v1670_v27 }
  0x27   :  { %1323 = vmatprep.mubr.msk.f32.mxu0 %vm69_vm3, %v51_v50 }
  0x2a   :  { %1324 = vmatmul.mubr.msk.f32.gmra.mrb[16].mxu0 %vm69_vm3, %v52_v51 }
  0x2b   :  { %1326 = vmatprep.mubr.msk.f32.mxu0 %vm69_vm3, %v53_v29  ;;  %1424 = vmatpush3.bf16.xpose.msk.msra.mxu1 %vm1770_vm4, %v1422_v17 }
  0x2c   :  { %1427 = vmatprep.subr.msk.bf16.mxu1 %vm1770_vm4, %v1425_v41 }
  0x2e   :  { %1327 = vmatmul.mubr.msk.f32.gmra.mrb[18].mxu0 %vm69_vm3, %v54_v30 }
  0x2f   :  { %1329 = vmatprep.mubr.msk.f32.mxu0 %vm69_vm3, %v55_v31 }
  0x32   :  { %1330 = vmatmul.mubr.msk.f32.gmra.mrb[20].mxu0 %vm69_vm3, %v56_v33 }
  0x33   :  { %1332 = vmatprep.mubr.msk.f32.mxu0 %vm69_vm3, %v57_v34  ;;  %1430 = vmatpush3.bf16.xpose.msk.msra.mxu1 %vm1770_vm4, %v1428_v21 }
  0x34   :  { %1433 = vmatprep.subr.msk.bf16.mxu1 %vm1770_vm4, %v1431_v45 }
  0x36   :  { %1333 = vmatmul.mubr.msk.f32.gmra.mrb[22].mxu0 %vm69_vm3, %v58_v35 }
  0x37   :  { %1335 = vmatprep.mubr.msk.f32.mxu0 %vm69_vm3, %v59_v38 }
  0x3a   :  { %1336 = vmatmul.mubr.msk.f32.gmra.mrb[24].mxu0 %vm69_vm3, %v60_v39 }
  0x3b   :  { %1338 = vmatprep.mubr.msk.f32.mxu0 %vm69_vm3, %v61_v40  ;;  %1436 = vmatpush3.bf16.xpose.msk.msra.mxu1 %vm1770_vm4, %v1434_v22 }
  0x3c   :  { %1439 = vmatprep.subr.msk.bf16.mxu1 %vm1770_vm4, %v1437_v46 }
  0x3e   :  { %1339 = vmatmul.mubr.msk.f32.gmra.mrb[26].mxu0 %vm69_vm3, %v62_v42 }
  0x3f   :  { %1341 = vmatprep.mubr.msk.f32.mxu0 %vm69_vm3, %v63_v43 }
  0x42   :  { %1342 = vmatmul.mubr.msk.f32.gmra.mrb[28].mxu0 %vm69_vm3, %v64_v44 }
  0x43   :  { %1344 = vmatprep.mubr.msk.f32.mxu0 %vm69_vm3, %v65_v47  ;;  %1442 = vmatpush3.bf16.xpose.msk.msra.mxu1 %vm1770_vm4, %v1440_v25 }
  0x44   :  { %1445 = vmatprep.subr.msk.bf16.mxu1 %vm1770_vm4, %v1443_v49 }
  0x46   :  { %1345 = vmatmul.mubr.msk.f32.gmra.mrb[30].mxu0 %vm69_vm3, %v66_v48 }
  0x47   :  { %1251 = vmatprep.mubr.msk.f32.mxu0 %vm504_vm5, %v1836_v55 }
  0x4b   :  { %1448 = vmatpush3.bf16.xpose.msk.msra.mxu1 %vm1770_vm4, %v1446_v28 }
  0x52   :  { %1290 = vmatmul.mubr.msk.f32.vlgmr.msra.gmra.mrb[0].mxu1 %vm69_vm3, %v498_v54 }
  0x53   :  { %1291 = vmatprep.mubr.msk.f32.mxu1 %vm69_vm3, %v499_v56 }
  0x56   :  { %1292 = vmatmul.mubr.msk.f32.gmra.mrb[2].mxu1 %vm69_vm3, %v499_v56 }
  0x57   :  { %1293 = vmatprep.mubr.msk.f32.mxu1 %vm69_vm3, %v500_v57 }
  0x5a   :  { %1294 = vmatmul.mubr.msk.f32.gmra.mrb[4].mxu1 %vm69_vm3, %v500_v57 }
  0x5b   :  { %883 = vmatprep.mubr.f32.mxu1 %v1505_v58 }
  0xdd   :  { %v1301_v60 = vpop.f32.mrb[0].mxu0 }
  0xde   :  { %vm403_vm6 = vcmp.eq.f32.partialorder %v1301_v60, %v1856_v59  ;;  %v236_v61 = vpop.f32.mrb[1].mxu0 }
  0xdf   :  { %v1860_v62 = vsel %vm403_vm6, 1.0, %v1505_v58  ;;  %vm402_vm7 = vcmp.eq.f32.partialorder %v236_v61, %v1856_v59 }
  0xe0   :  { %v1864_v63 = vsel %vm402_vm7, 1.0, %v1505_v58 }
  0xe1   :  { %v1356_v0 = vpack.c.bf16 %v1860_v62, %v1864_v63  ;;  %v1304_v1 = vpop.f32.mrb[2].mxu0 }
  0xe2   :  { %vm405_vm8 = vcmp.eq.f32.partialorder %v1304_v1, %v1856_v59  ;;  %v246_v2 = vpop.f32.mrb[3].mxu0 }
  0xe3   :  { %v1870_v3 = vsel %vm405_vm8, 1.0, %v1505_v58  ;;  %vm404_vm9 = vcmp.eq.f32.partialorder %v246_v2, %v1856_v59 }
  0xe4   :  { %v1874_v4 = vsel %vm404_vm9, 1.0, %v1505_v58 }
  0xe5   :  { %v1362_v6 = vpack.c.bf16 %v1870_v3, %v1874_v4  ;;  %v1307_v7 = vpop.f32.mrb[4].mxu0 }
  0xe6   :  { %vm407_vm10 = vcmp.eq.f32.partialorder %v1307_v7, %v1856_v59  ;;  %v256_v8 = vpop.f32.mrb[5].mxu0 }
  0xe7   :  { %v1880_v9 = vsel %vm407_vm10, 1.0, %v1505_v58  ;;  %vm406_vm11 = vcmp.eq.f32.partialorder %v256_v8, %v1856_v59 }
  0xe8   :  { %v1884_v10 = vsel %vm406_vm11, 1.0, %v1505_v58  ;;  %vm1944_vm11 = vmpackc.low %vm504_vm5, %vm504_vm5 }
  0xe9   :  { %v1368_v11 = vpack.c.bf16 %v1880_v9, %v1884_v10  ;;  %v1310_v12 = vpop.f32.mrb[6].mxu0 }
  0xea   :  { %vm409_vm12 = vcmp.eq.f32.partialorder %v1310_v12, %v1856_v59  ;;  %v266_v13 = vpop.f32.mrb[7].mxu0 }
  0xeb   :  { %v1890_v14 = vsel %vm409_vm12, 1.0, %v1505_v58  ;;  %vm408_vm13 = vcmp.eq.f32.partialorder %v266_v13, %v1856_v59 }
  0xec   :  { %v1894_v15 = vsel %vm408_vm13, 1.0, %v1505_v58 }
  0xed   :  { %v1374_v16 = vpack.c.bf16 %v1890_v14, %v1894_v15  ;;  %v1313_v17 = vpop.f32.mrb[8].mxu0  ;;  %v503_v14 = vld [vmem:[%s2082_s4 + $0x10] sm:$0xf] }
  0xee   :  { %vm411_vm14 = vcmp.eq.f32.partialorder %v1313_v17, %v1856_v59  ;;  %v276_v18 = vpop.f32.mrb[9].mxu0 }
  0xef   :  { %v1900_v19 = vsel %vm411_vm14, 1.0, %v1505_v58  ;;  %vm410_vm15 = vcmp.eq.f32.partialorder %v276_v18, %v1856_v59 }
  0xf0   :  { %v1904_v20 = vsel %vm410_vm15, 1.0, %v1505_v58 }
  0xf1   :  { %v1380_v21 = vpack.c.bf16 %v1900_v19, %v1904_v20  ;;  %v1316_v22 = vpop.f32.mrb[10].mxu0 }
  0xf2   :  { %vm413_vm0 = vcmp.eq.f32.partialorder %v1316_v22, %v1856_v59  ;;  %v286_v23 = vpop.f32.mrb[11].mxu0 }
  0xf3   :  { %v1910_v24 = vsel %vm413_vm0, 1.0, %v1505_v58  ;;  %vm412_vm1 = vcmp.eq.f32.partialorder %v286_v23, %v1856_v59 }
  0xf4   :  { %v1914_v25 = vsel %vm412_vm1, 1.0, %v1505_v58 }
  0xf5   :  { %v1386_v26 = vpack.c.bf16 %v1910_v24, %v1914_v25  ;;  %v1319_v27 = vpop.f32.mrb[12].mxu0  ;;  %v793_v24 = vld [vmem:[%s2084_s6] sm:$0xff]  ;;  %v1506_v25 = vmov 0  }
  0xf6   :  { %vm415_vm4 = vcmp.eq.f32.partialorder %v1319_v27, %v1856_v59  ;;  %v296_v28 = vpop.f32.mrb[13].mxu0  ;;  %1470 = vset.pattern.permute.xlu0 %v1506_v25  ;;  %1471 = vset.pattern.permute.xlu1 %v1506_v25 }
  0xf7   :  { %v1920_v29 = vsel %vm415_vm4, 1.0, %v1505_v58  ;;  %vm414_vm6 = vcmp.eq.f32.partialorder %v296_v28, %v1856_v59  ;;  %797 = vperm.xlu0 %1470, %v793_v24  }
  0xf8   :  { %v1924_v30 = vsel %vm414_vm6, 1.0, %v1505_v58 }
  0xf9   :  { %v1392_v31 = vpack.c.bf16 %v1920_v29, %v1924_v30  ;;  %v1322_v32 = vpop.f32.mrb[14].mxu0 }
  0xfa   :  { %vm417_vm7 = vcmp.eq.f32.partialorder %v1322_v32, %v1856_v59  ;;  %v306_v33 = vpop.f32.mrb[15].mxu0 }
  0xfb   :  { %v1930_v34 = vsel %vm417_vm7, 1.0, %v1505_v58  ;;  %vm416_vm8 = vcmp.eq.f32.partialorder %v306_v33, %v1856_v59 }
  0xfc   :  { %v1934_v35 = vsel %vm416_vm8, 1.0, %v1505_v58 }
  0xfd   :  { %v1398_v36 = vpack.c.bf16 %v1930_v34, %v1934_v35  ;;  %v1325_v37 = vpop.f32.mrb[16].mxu0 }
  0xfe   :  { %vm419_vm9 = vcmp.eq.f32.partialorder %v1325_v37, %v1856_v59  ;;  %v316_v38 = vpop.f32.mrb[17].mxu0 }
  0xff   :  { %v1091_v39 = vsel %vm419_vm9, 1.0, %v1505_v58  ;;  %vm418_vm10 = vcmp.eq.f32.partialorder %v316_v38, %v1856_v59 }
 0x100   :  { %v1090_v40 = vsel %vm418_vm10, 1.0, %v1505_v58 }
 0x101   :  { %v1353_v42 = vpack.c.bf16 %v1091_v39, %v1090_v40  ;;  %v1328_v43 = vpop.f32.mrb[18].mxu0 }
 0x102   :  { %vm421_vm12 = vcmp.eq.f32.partialorder %v1328_v43, %v1856_v59  ;;  %v326_v44 = vpop.f32.mrb[19].mxu0 }
 0x103   :  { %1355 = vmatprep.subr.msk.bf16.mxu0 %vm1944_vm11, %v1353_v42  ;;  %v1093_v45 = vsel %vm421_vm12, 1.0, %v1505_v58  ;;  %vm420_vm13 = vcmp.eq.f32.partialorder %v326_v44, %v1856_v59 }
 0x104   :  { %1358 = vmatpush3.bf16.xpose.msk.msra.mxu0 %vm1944_vm11, %v1356_v0  ;;  %v1092_v46 = vsel %vm420_vm13, 1.0, %v1505_v58 }
 0x105   :  { %v1359_v47 = vpack.c.bf16 %v1093_v45, %v1092_v46  ;;  %v1331_v48 = vpop.f32.mrb[20].mxu0 }
 0x106   :  { %vm423_vm14 = vcmp.eq.f32.partialorder %v1331_v48, %v1856_v59  ;;  %v336_v49 = vpop.f32.mrb[21].mxu0  ;;  %v792_v48 = vld [vmem:[%s2083_s5 + $0x8] sm:$0x3] }
 0x107   :  { %1361 = vmatprep.subr.msk.bf16.mxu0 %vm1944_vm11, %v1359_v47  ;;  %v1095_v50 = vsel %vm423_vm14, 1.0, %v1505_v58  ;;  %vm422_vm15 = vcmp.eq.f32.partialorder %v336_v49, %v1856_v59  ;;  %v791_v47 = vld [vmem:[%s2083_s5] sm:$0xff] }
 0x108   :  { %v1094_v51 = vsel %vm422_vm15, 1.0, %v1505_v58  ;;  %v901_v49 = vld [vmem:[#allocation2] sm:$0x1] }
 0x109   :  { %v1365_v52 = vpack.c.bf16 %v1095_v50, %v1094_v51  ;;  %v1334_v53 = vpop.f32.mrb[22].mxu0  ;;  %904 = vperm.xlu1 %1471, %v901_v49  }
 0x10a   :  { %vm425_vm0 = vcmp.eq.f32.partialorder %v1334_v53, %v1856_v59  ;;  %v346_v54 = vpop.f32.mrb[23].mxu0 }
 0x10b   :  { %v1097_v56 = vsel %vm425_vm0, 1.0, %v1505_v58  ;;  %vm424_vm1 = vcmp.eq.f32.partialorder %v346_v54, %v1856_v59 }
 0x10c   :  { %1364 = vmatpush3.bf16.xpose.msk.msra.mxu0 %vm1944_vm11, %v1362_v6  ;;  %v1096_v57 = vsel %vm424_vm1, 1.0, %v1505_v58 }
 0x10d   :  { %1367 = vmatprep.subr.msk.bf16.mxu0 %vm1944_vm11, %v1365_v52  ;;  %v1371_v60 = vpack.c.bf16 %v1097_v56, %v1096_v57  ;;  %v1337_v61 = vpop.f32.mrb[24].mxu0 }
 0x10e   :  { %vm427_vm4 = vcmp.eq.f32.partialorder %v1337_v61, %v1856_v59  ;;  %v356_v62 = vpop.f32.mrb[25].mxu0 }
 0x10f   :  { %v1099_v63 = vsel %vm427_vm4, 1.0, %v1505_v58  ;;  %vm426_vm6 = vcmp.eq.f32.partialorder %v356_v62, %v1856_v59 }
 0x110   :  { %v1098_v0 = vsel %vm426_vm6, 1.0, %v1505_v58 }
 0x111   :  { %v1377_v1 = vpack.c.bf16 %v1099_v63, %v1098_v0  ;;  %v1340_v2 = vpop.f32.mrb[26].mxu0 }
 0x112   :  { %vm429_vm7 = vcmp.eq.f32.partialorder %v1340_v2, %v1856_v59  ;;  %v366_v3 = vpop.f32.mrb[27].mxu0 }
 0x113   :  { %v1101_v4 = vsel %vm429_vm7, 1.0, %v1505_v58  ;;  %vm428_vm8 = vcmp.eq.f32.partialorder %v366_v3, %v1856_v59 }
 0x114   :  { %1370 = vmatpush3.bf16.xpose.msk.msra.mxu0 %vm1944_vm11, %v1368_v11  ;;  %v1100_v6 = vsel %vm428_vm8, 1.0, %v1505_v58 }
 0x115   :  { %1373 = vmatprep.subr.msk.bf16.mxu0 %vm1944_vm11, %v1371_v60  ;;  %v1383_v7 = vpack.c.bf16 %v1101_v4, %v1100_v6  ;;  %v1343_v8 = vpop.f32.mrb[28].mxu0  ;;  %v900_v4 = vld [vmem:[%s2085_s7] sm:$0x1]  ;;  %v907_v6 = vlaneseq  ;;  %s1508_s7 = smov [#allocation3]  }
 0x116   :  { %vm431_vm9 = vcmp.eq.f32.partialorder %v1343_v8, %v1856_v59  ;;  %v376_v12 = vpop.f32.mrb[29].mxu0  ;;  %s1032_s26 = sshll.u32 %s1508_s7, 4  ;;  %s1033_s26 = int_to_ptr.vmem [resolvable:$true] %s1032_s26 }
 0x117   :  { %v1103_v13 = vsel %vm431_vm9, 1.0, %v1505_v58  ;;  %vm430_vm10 = vcmp.eq.f32.partialorder %v376_v12, %v1856_v59  ;;  %s1480_s27 = scalar_lea.vmem %s1033_s26, 32  ;;  %p1485_p1 = scmp.lt.s32.totalorder %s1033_s26, %s1033_s26 }
 0x118   :  { %v1102_v17 = vsel %vm430_vm10, 1.0, %v1505_v58  ;;  %p1481_p0 = scmp.ne.s32.totalorder %s1033_s26, %s1480_s27  ;;  %p1486_p2 = scmp.lt.s32.totalorder %s1480_s27, %s1480_s27 }
 0x119   :  { %v1389_v9 = vpack.c.bf16 %v1103_v13, %v1102_v17  ;;  %v1346_v10 = vpop.f32.mrb[30].mxu0 }
 0x11a   :  { %vm433_vm12 = vcmp.eq.f32.partialorder %v1346_v10, %v1856_v59  ;;  %v386_v11 = vpop.f32.mrb[31].mxu0  ;;  %p1487_p3 = por %p1486_p2, %p1485_p1 }
 0x11b   :  { %v1105_v18 = vsel %vm433_vm12, 1.0, %v1505_v58  ;;  %vm432_vm13 = vcmp.eq.f32.partialorder %v386_v11, %v1856_v59  ;;  %v502_v59 = vld [vmem:[%s2082_s4 + $0x8] sm:$0xff] }
 0x11c   :  { %1376 = vmatpush3.bf16.xpose.msk.msra.mxu0 %vm1944_vm11, %v1374_v16  ;;  %v1104_v22 = vsel %vm432_vm13, 1.0, %v1505_v58  ;;  %p1488_p4 = pnand %p1487_p3, %p1481_p0 }
 0x11d   :  { %1379 = vmatprep.subr.msk.bf16.mxu0 %vm1944_vm11, %v1377_v1  ;;  %v1395_v23 = vpack.c.bf16 %v1105_v18, %v1104_v22 }
 0x124   :  { %1382 = vmatpush3.bf16.xpose.msk.msra.mxu0 %vm1944_vm11, %v1380_v21 }
 0x125   :  { %1385 = vmatprep.subr.msk.bf16.mxu0 %vm1944_vm11, %v1383_v7  ;;  %v768_v15 = vpop.f32.mrb[0].mxu1  ;;  %v908_v7 = vshrl.u32 %v907_v6, 7 }
 0x126   :  { %v770_v16 = vpop.f32.mrb[1].mxu1 }
 0x127   :  { %v909_v8 = vsub.s32 0, %v908_v7 }
 0x129   :  { %v774_v19 = vpop.f32.mrb[2].mxu1 }
 0x12a   :  { %v776_v20 = vpop.f32.mrb[3].mxu1 }
 0x12c   :  { %1388 = vmatpush3.bf16.xpose.msk.msra.mxu0 %vm1944_vm11, %v1386_v26  ;;  %v794_v26 = vld [vmem:[%s2084_s6 + $0x8] sm:$0x3] }
 0x12d   :  { %1391 = vmatprep.subr.msk.bf16.mxu0 %vm1944_vm11, %v1389_v9  ;;  %v780_v21 = vpop.f32.mrb[4].mxu1  ;;  %802 = vperm.xlu0 %1470, %v794_v26  }
 0x134   :  { %1394 = vmatpush3.bf16.xpose.msk.msra.mxu0 %vm1944_vm11, %v1392_v31 }
 0x135   :  { %1397 = vmatprep.subr.msk.bf16.mxu0 %vm1944_vm11, %v1395_v23 }
 0x13c   :  { %1400 = vmatpush3.bf16.xpose.msk.msra.mxu0 %vm1944_vm11, %v1398_v36  ;;  %vm805_vm11 = vcmask 162816  }
 0x143   :  { %1252 = vmatmul.mubr.msk.f32.vlgmr.msra.gmra.mrb[32].mxu0 %vm504_vm5, %v1836_v55  ;;  %v782_v55 = vpop.f32.mrb[5].mxu1 }
 0x144   :  { %1253 = vmatprep.mubr.msk.f32.mxu0 %vm504_vm5, %v502_v59 }
 0x147   :  { %1254 = vmatmul.mubr.msk.f32.gmra.mrb[34].mxu0 %vm504_vm5, %v502_v59 }
 0x148   :  { %1255 = vmatprep.mubr.msk.f32.mxu0 %vm504_vm5, %v503_v14 }
 0x14b   :  { %1256 = vmatmul.mubr.msk.f32.gmra.mrb[36].mxu0 %vm504_vm5, %v503_v14  ;;  %vm812_vm5 = vcmask 1043456  }
 0x14c   :  { %984 = vmatprep.mubr.f32.mxu0 %v1505_v58 }
 0x176   :  { %v798_v50 = vpop.permute.xlu0 %797 }
 0x188   :  { %v905_v12 = vpop.permute.xlu1 %904 }
 0x189   :  { %v910_v13 = vrot.slane %v905_v12, %v909_v8 }
 0x1ac   :  { %v803_v54 = vpop.permute.xlu0 %802 }
 0x216   :  { %v676_v27 = vpop.f32.mrb[32].mxu0 }
 0x217   :  { %v769_v28 = vadd.f32 %v768_v15, %v676_v27  ;;  %v678_v29 = vpop.f32.mrb[33].mxu0  ;;  %v1507_v15 = vmov 1966171168  }
 0x218   :  { %v771_v30 = vadd.f32 %v770_v16, %v678_v29  ;;  %v1007_v16 = vunpack.c.l.s4 %v1507_v15 }
 0x219   :  { %v785_v35 = vmax.f32 %v769_v28, 0.0 }
 0x21a   :  { %v682_v31 = vpop.f32.mrb[34].mxu0  ;;  %v786_v37 = vmax.f32 %v771_v30, 0.0 }
 0x21b   :  { %v775_v32 = vadd.f32 %v774_v19, %v682_v31  ;;  %v684_v33 = vpop.f32.mrb[35].mxu0  ;;  %v1008_v19 = vunpack.c.0.s8 %v1007_v16 }
 0x21c   :  { %v777_v34 = vadd.f32 %v776_v20, %v684_v33 }
 0x21d   :  { %v787_v36 = vmax.f32 %v775_v32, 0.0 }
 0x21e   :  { %v788_v38 = vmax.f32 %v777_v34, 0.0  ;;  %v688_v39 = vpop.f32.mrb[36].mxu0 }
 0x21f   :  { %v1451_v40 = vpack.c.bf16 %v787_v36, %v785_v35  ;;  %v781_v41 = vadd.f32 %v780_v21, %v688_v39  ;;  %v690_v42 = vpop.f32.mrb[37].mxu0  ;;  %v1011_v21 = vsub.s32 %v1008_v19, %v908_v7 }
 0x220   :  { %v1449_v43 = vpack.c.bf16 %v788_v38, %v786_v37  ;;  %v783_v44 = vadd.f32 %v782_v55, %v690_v42 }
 0x221   :  { %v789_v46 = vmax.f32 %v781_v41, 0.0 }
 0x222   :  { %v790_v45 = vmax.f32 %v783_v44, 0.0  ;;  %1450 = vmatprep.subr.bf16.mxu1 %v1449_v43 }
 0x223   :  { %1452 = vmatpush1.bf16.msra.mxu1 %v1451_v40 }
 0x224   :  { %1176 = vmatprep.subr.msk.mxu1 %vm812_vm5, %v790_v45 }
 0x227   :  { %1177 = vmatpush1.msk.msra.mxu1 %vm812_vm5, %v789_v46 }
 0x228   :  { %1178 = vmatmul.mubr.msk.f32.vlgmr.msra.gmra.mrb[6].mxu1 %vm805_vm11, %v791_v47 }
 0x229   :  { %889 = vmatprep.mubr.f32.mxu1 %v1505_v58 }
 0x22c   :  { %1179 = vmatmul.mubr.msk.f32.gmra.mrb[8].mxu1 %vm805_vm11, %v792_v48 }
 0x2fb   :  { %v885_v51 = vpop.f32.mrb[6].mxu1 }
 0x2fc   :  { %v887_v52 = vpop.f32.mrb[7].mxu1  ;;  %v886_v53 = vadd.f32 %v885_v51, %v798_v50 }
 0x2fd   :  { %v888_v56 = vadd.f32 %v887_v52, %v798_v50 }
 0x2fe   :  { %v896_v63 = vmax.f32 %v886_v53, 0.0 }
 0x2ff   :  { %v891_v57 = vpop.f32.mrb[8].mxu1  ;;  %v897_v58 = vmax.f32 %v888_v56, 0.0 }
 0x300   :  { %v892_v60 = vadd.f32 %v891_v57, %v803_v54  ;;  %v893_v61 = vpop.f32.mrb[9].mxu1 }
 0x301   :  { %v894_v62 = vadd.f32 %v893_v61, %v803_v54 }
 0x302   :  { %v898_v0 = vmax.f32 %v892_v60, 0.0 }
 0x303   :  { %v899_v1 = vmax.f32 %v894_v62, 0.0 }
 0x304   :  { %v1456_v2 = vpack.c.bf16 %v898_v0, %v896_v63 }
 0x305   :  { %v1453_v3 = vpack.c.bf16 %v899_v1, %v897_v58 }
 0x307   :  { %1455 = vmatprep.subr.msk.bf16.mxu0 %vm1573_vm2, %v1453_v3 }
 0x308   :  { %1458 = vmatpush1.bf16.msk.msra.mxu0 %vm1573_vm2, %v1456_v2  ;;  %vm1023_vm2 = vcmp.lt.s32.totalorder %v907_v6, 256 }
 0x30b   :  { %1182 = vmatmul.mubr.msk.f32.vlgmr.msra.gmra.mrb[38].mxu0 %vm69_vm3, %v900_v4 }
 0x3de   :  { %v986_v17 = vpop.f32.mrb[38].mxu0 }
 0x3df   :  { %v987_v9 = vadd.f32 %v986_v17, %v910_v13  ;;  %v988_v10 = vpop.f32.mrb[39].mxu0 }
 0x3e0   :  { %v989_v11 = vadd.f32 %v988_v10, %v910_v13 }
 0x3e1   :  { %v1183_v18 = vmul.f32 -1.442695, %v987_v9 }
 0x3e2   :  { %v1184_v22 = vmul.f32 -1.442695, %v989_v11 }
 0x3e3   :  { %1472 = vpow2.f32 %v1183_v18 }
 0x3e4   :  { %1474 = vpow2.f32 %v1184_v22 }
 0x3ed   :  { %v1473_v5 = vpop.eup %1472 }
 0x3ee   :  { %v1475_v23 = vpop.eup %1474  ;;  %v997_v59 = vadd.f32 1.0, %v1473_v5 }
 0x3ef   :  { %v998_v14 = vadd.f32 1.0, %v1475_v23 }
 0x3f0   :  { %1476 = vrcp.f32 %v997_v59 }
 0x3f1   :  { %1478 = vrcp.f32 %v998_v14 }
 0x3fa   :  { %v1477_v20 = vpop.eup %1476 }
 0x3fb   :  { %v1479_v55 = vpop.eup %1478 }
 0x3fc   :  { %v1005_v24 = vcombine.low %v1477_v20, %v1479_v55 }
 0x3fe   :  { %v1012_v25 = vrot.slane %v1005_v24, %v1011_v21 }
 0x400   :  { %v1019_v26 = vrot.slane %v1012_v25, %v1011_v21 }
 0x402   :  { %1025 = vst.msk [vmem:[#allocation3] sm:$0x3] %vm1023_vm2, %v1019_v26 }
 0x403   :  { %1491 = shalt.err (!%p1488_p4)
}
 0x404   :  { %s1492_s30 = scalar_lea.hbm %s2087_s9, 32 }
 0x405   :  { %p1493_p5 = scmp.ne.s32.totalorder %s2087_s9, %s1492_s30  ;;  %p1496_p6 = scmp.lt.u32.totalorder %s1492_s30, %s2087_s9 }
 0x407   :  { %p1498_p7 = pnand %p1496_p6, %p1493_p5 }
 0x409   :  { %1501 = shalt.err (!%p1498_p7)
}
 0x40a   :  { %1035 = dma.vmem_to_hbm [thread:$0]  %s1033_s26, 32, %s2087_s9, [#allocation4]  }
 0x40b   :  { %1502 = dma.done.wait [#allocation4], 32  }
 0x40c   :  { %1503 = vsyncadd [#allocation4], 4294967264 }
 0x40d   :  { %1039 = vsyncpa [#allocation4], 1 }

</bundles_post_ra>
